<compile_context>
chip_gen: v7x
topology: tpu7x:2x2x1
jax: 0.10.0
libtpu: 0.0.40
codegen_flags: <defaults>
</compile_context>

<pallas_src>
import math
import functools

import jax
import jax.numpy as jnp
from jax.experimental import pallas as pl
from jax.experimental.pallas import tpu as pltpu


def make_positional_encoding_table(max_len: int, embedding_dim: int) -> jnp.ndarray:
    """Builds the (1, max_len, embedding_dim) sin/cos table (same math as torch)."""
    position = jnp.arange(0, max_len, dtype=jnp.float32)[:, None]          # (L, 1)
    div_term = jnp.exp(
        jnp.arange(0, embedding_dim, 2, dtype=jnp.float32)
        * (-math.log(10000.0) / embedding_dim)
    )                                                                       # (D/2,)
    pe = jnp.zeros((max_len, embedding_dim), dtype=jnp.float32)
    pe = pe.at[:, 0::2].set(jnp.sin(position * div_term))
    pe = pe.at[:, 1::2].set(jnp.cos(position * div_term))
    return pe[None, :, :]                                                   # (1, L, D)


def _dropout_threshold_i32(p: float) -> int:
    """Signed-int32 threshold t such that P(uniform_int32 >= t) == 1 - p."""
    t_u = min(int(round(p * (1 << 32))), (1 << 32) - 1)
    return t_u - (1 << 31)


def _choose_chunk(n: int, target_elems: int) -> int:
    """Largest multiple of 128 that divides n and is <= max(target_elems, 128).

    Falls back to n itself (single full-row block) when n is not a multiple of
    128 — allowed because the block then spans the full array dim.
    """
    if n % 128 != 0:
        return n
    m = n // 128
    kmax = max(1, min(m, max(1, target_elems // 128)))
    for k in range(kmax, 0, -1):
        if m % k == 0:
            return 128 * k
    return 128


# ---------------------------------------------------------------------------
# Kernels
# ---------------------------------------------------------------------------

def _posenc_add_kernel(x_ref, pe_ref, o_ref):
    # x_ref/o_ref blocks: (B, TC); pe_ref block: (1, TC) -> broadcasts over B.
    o_ref[...] = x_ref[...] + pe_ref[...]


def _posenc_dropout_kernel(x_ref, pe_ref, bits_ref, o_ref, *, threshold: int,
                           scale: float):
    y = x_ref[...] + pe_ref[...]                       # (B, TC) + (1, TC)
    keep = bits_ref[...] >= jnp.int32(threshold)       # integer-threshold mask
    y = jnp.where(keep, y * jnp.asarray(scale, y.dtype), jnp.zeros_like(y))
    o_ref[...] = y


# ---------------------------------------------------------------------------
# Wrapper
# ---------------------------------------------------------------------------

def positional_encoding_forward(x, pe, *, p: float = 0.1, training: bool = False,
                                rng_key=None, target_block_bytes: int = 1 << 20):
    """x: (B, L, D), pe: (1, L, D) -> (B, L, D).  Matches PositionalEncoding.forward."""
    B, L, D = x.shape
    assert pe.shape == (1, L, D)
    dtype = x.dtype

    N = L * D
    x2 = x.reshape(B, N)
    pe2 = pe.reshape(1, N).astype(dtype)

    itemsize = jnp.dtype(dtype).itemsize
    tc = _choose_chunk(N, max(128, target_block_bytes // (max(B, 1) * itemsize)))
    n_chunks = N // tc

    x_spec = pl.BlockSpec((B, tc), lambda c: (0, c))
    pe_spec = pl.BlockSpec((1, tc), lambda c: (0, c))
    out_spec = pl.BlockSpec((B, tc), lambda c: (0, c))
    cparams = pltpu.CompilerParams(dimension_semantics=("parallel",))

    # NOTE: in a fused model you would typically bypass the pallas_call in eval
    # mode (plain `x + pe` lets XLA fuse with neighbours); kept in-kernel here
    # so the kernel path is exercised and checked in both modes.
    if training and p > 0.0:
        assert p < 1.0, "dropout p == 1.0 would divide by zero (1/(1-p))"
        if rng_key is None:
            rng_key = jax.random.PRNGKey(0)
        # Random bits generated outside the kernel (portable: works on real TPU
        # and under interpret mode).  Mask is applied in-kernel.
        bits_u32 = jax.random.bits(rng_key, (B, N), dtype=jnp.uint32)
        bits_i32 = jax.lax.bitcast_convert_type(bits_u32, jnp.int32)
        kernel = functools.partial(
            _posenc_dropout_kernel,
            threshold=_dropout_threshold_i32(p),
            scale=1.0 / (1.0 - p),
        )
        out2 = pl.pallas_call(
            kernel,
            out_shape=jax.ShapeDtypeStruct((B, N), dtype),
            grid=(n_chunks,),
            in_specs=[x_spec, pe_spec, pl.BlockSpec((B, tc), lambda c: (0, c))],
            out_specs=out_spec,
            compiler_params=cparams,
        )(x2, pe2, bits_i32)
    else:
        out2 = pl.pallas_call(
            _posenc_add_kernel,
            out_shape=jax.ShapeDtypeStruct((B, N), dtype),
            grid=(n_chunks,),
            in_specs=[x_spec, pe_spec],
            out_specs=out_spec,
            compiler_params=cparams,
        )(x2, pe2)

    return out2.reshape(B, L, D)


if __name__ == "__main__":
    # Small shapes consistent with the module: batch=2, max_len=16, embedding_dim=32
    B, MAX_LEN, EMB = 2, 16, 32
    P_DROP = 0.1

    key = jax.random.PRNGKey(0)
    kx, kdrop = jax.random.split(key)
    x = jax.random.normal(kx, (B, MAX_LEN, EMB), dtype=jnp.float32)
    pe = make_positional_encoding_table(MAX_LEN, EMB)

    # ---- Eval mode: dropout is identity -> deterministic check vs x + pe ----
    out_eval = jax.block_until_ready(
        positional_encoding_forward(x, pe, p=P_DROP, training=False))
    assert out_eval.shape == x.shape
    assert jnp.allclose(out_eval, x + pe, atol=1e-6, rtol=1e-6)

    # ---- Train mode: dropout active.  Random bits come from jax.random with a
    # known key, so the result is exactly reproducible -> check vs plain JAX. ----
    out_train = jax.block_until_ready(
        positional_encoding_forward(x, pe, p=P_DROP, training=True, rng_key=kdrop))
    assert out_train.shape == x.shape

    bits_ref = jax.lax.bitcast_convert_type(
        jax.random.bits(kdrop, (B, MAX_LEN * EMB), dtype=jnp.uint32), jnp.int32
    ).reshape(B, MAX_LEN, EMB)
    keep_ref = bits_ref >= _dropout_threshold_i32(P_DROP)
    ref_train = jnp.where(keep_ref,
                          (x + pe) * jnp.float32(1.0 / (1.0 - P_DROP)),
                          jnp.float32(0.0))
    assert jnp.allclose(out_train, ref_train, atol=1e-6, rtol=1e-6)

    print("KERNEL_OK")
</pallas_src>

<mosaic_0001>
module attributes {stable_mosaic.version = 11 : i64} {
  func.func @_posenc_add_kernel(%arg0: i32, %arg1: memref<2x512xf32, #tpu.memory_space<vmem>>, %arg2: memref<1x512xf32, #tpu.memory_space<vmem>>, %arg3: memref<2x512xf32, #tpu.memory_space<vmem>>) attributes {dimension_semantics = [#tpu.dimension_semantics<parallel>], iteration_bounds = array<i64: 1>, scalar_prefetch = 0 : i64, scratch_operands = 0 : i64, tpu.core_type = #tpu.core_type<tc>, window_params = [{transform_indices = @transform_0, window_bounds = array<i64: 2, 512>}, {transform_indices = @transform_1, window_bounds = array<i64: 1, 512>}, {transform_indices = @transform_2, window_bounds = array<i64: 2, 512>}]} {
    %c0 = arith.constant 0 : index
    %c0_0 = arith.constant 0 : index
    %0 = vector.load %arg1[%c0, %c0_0] : memref<2x512xf32, #tpu.memory_space<vmem>>, vector<2x512xf32>
    %c0_1 = arith.constant 0 : index
    %c0_2 = arith.constant 0 : index
    %1 = vector.load %arg2[%c0_1, %c0_2] : memref<1x512xf32, #tpu.memory_space<vmem>>, vector<1x512xf32>
    %2 = vector.broadcast %1 : vector<1x512xf32> to vector<2x512xf32>
    %3 = arith.addf %0, %2 : vector<2x512xf32>
    %c0_3 = arith.constant 0 : index
    %c0_4 = arith.constant 0 : index
    %4 = vector.load %arg3[%c0_3, %c0_4] : memref<2x512xf32, #tpu.memory_space<vmem>>, vector<2x512xf32>
    tpu.vector_store %arg3[%c0_3, %c0_4], %3 {strides = array<i32>} : memref<2x512xf32, #tpu.memory_space<vmem>>, vector<2x512xf32>,
    return
  }
  func.func @transform_0(%arg0: i32) -> (i32, i32) {
    %c0_i32 = arith.constant 0 : i32
    %c0_i32_0 = arith.constant 0 : i32
    return %c0_i32, %arg0 : i32, i32
  }
  func.func @transform_1(%arg0: i32) -> (i32, i32) {
    %c0_i32 = arith.constant 0 : i32
    %c0_i32_0 = arith.constant 0 : i32
    return %c0_i32, %arg0 : i32, i32
  }
  func.func @transform_2(%arg0: i32) -> (i32, i32) {
    %c0_i32 = arith.constant 0 : i32
    %c0_i32_0 = arith.constant 0 : i32
    return %c0_i32, %arg0 : i32, i32
  }
}

</mosaic_0001>

<bundles_post_ra>
// kernel: tpu_custom_call.1
= control target key start
LH: loop header
LB: loop body
LE: loop exit
PB: predicated region body
PF: predicated region fallthrough
CT: control target
= control target key end

     0   :  { %7 = vsyncpa [#allocation3], 0  ;;  %s222_s0 = inlined_call_operand.hbm [shape: f32[2,512], index: 0, kind: input, shape index: {}]   ;;  %s223_s1 = inlined_call_operand.hbm [shape: f32[1,512], index: 1, kind: input, shape index: {}]   ;;  %s224_s2 = inlined_call_operand.hbm [shape: f32[2,512], index: 2, kind: output, shape index: {}]  }
   0x1   :  { %8 = vsyncpa [#allocation6], 0 }
   0x2   :  { %9 = vsyncpa [#allocation4], 0  ;;  %s167_s9 = smov [#allocation2]   ;;  %s168_s11 = smov [#allocation5]  }
   0x3   :  { %s16_s10 = sshll.u32 %s167_s9, 4  ;;  %s26_s12 = sshll.u32 %s168_s11, 4  ;;  %s17_s10 = int_to_ptr.vmem [resolvable:$true] %s16_s10  ;;  %s27_s12 = int_to_ptr.vmem [resolvable:$true] %s26_s12 }
   0x4   :  { %s95_s15 = scalar_lea.hbm %s222_s0, 128 }
   0x5   :  { %p96_p0 = scmp.ne.s32.totalorder %s222_s0, %s95_s15  ;;  %p99_p1 = scmp.lt.u32.totalorder %s95_s15, %s222_s0 }
   0x7   :  { %p101_p2 = pnand %p99_p1, %p96_p0 }
   0x9   :  { %104 = shalt.err (!%p101_p2)
}
   0xa   :  { %s105_s20 = scalar_lea.vmem %s17_s10, 128  ;;  %p110_p4 = scmp.lt.s32.totalorder %s17_s10, %s17_s10 }
   0xb   :  { %p106_p3 = scmp.ne.s32.totalorder %s17_s10, %s105_s20  ;;  %p111_p5 = scmp.lt.s32.totalorder %s105_s20, %s105_s20 }
   0xd   :  { %p112_p6 = por %p111_p5, %p110_p4 }
   0xf   :  { %p113_p7 = pnand %p112_p6, %p106_p3 }
  0x11   :  { %116 = shalt.err (!%p113_p7)
}
  0x12   :  { %19 = dma.hbm_to_vmem [thread:$0]  %s222_s0, 128, %s17_s10, [#allocation3]  }
  0x13   :  { %s117_s25 = scalar_lea.hbm %s223_s1, 64 }
  0x14   :  { %p118_p8 = scmp.ne.s32.totalorder %s223_s1, %s117_s25  ;;  %p121_p9 = scmp.lt.u32.totalorder %s117_s25, %s223_s1 }
  0x16   :  { %p123_p10 = pnand %p121_p9, %p118_p8 }
  0x18   :  { %126 = shalt.err (!%p123_p10)
}
  0x19   :  { %s127_s30 = scalar_lea.vmem %s27_s12, 64  ;;  %p132_p12 = scmp.lt.s32.totalorder %s27_s12, %s27_s12 }
  0x1a   :  { %p128_p11 = scmp.ne.s32.totalorder %s27_s12, %s127_s30  ;;  %p133_p13 = scmp.lt.s32.totalorder %s127_s30, %s127_s30 }
  0x1c   :  { %p134_p0 = por %p133_p13, %p132_p12 }
  0x1e   :  { %p135_p1 = pnand %p134_p0, %p128_p11 }
  0x20   :  { %138 = shalt.err (!%p135_p1)
}
  0x21   :  { %29 = dma.hbm_to_vmem [thread:$0]  %s223_s1, 64, %s27_s12, [#allocation6]  }
  0x22   :  { %161 = dma.done.wait [#allocation3], 128  }
  0x23   :  { %162 = vsyncadd [#allocation3], 4294967168 }
  0x24   :  { %163 = dma.done.wait [#allocation6], 64  }
  0x25   :  { %164 = vsyncadd [#allocation6], 4294967232  ;;  %v39_v0 = vlaneseq  ;;  %v169_v1 = vmov 1983009808   ;;  %v37_v9 = vld [vmem:[#allocation5] sm:$0xf] }
  0x26   :  { %v58_v2 = vunpack.c.l.s4 %v169_v1  ;;  %v36_v19 = vld [vmem:[#allocation2] sm:$0xff]  ;;  %s170_s1 = smov [#allocation7]  }
  0x27   :  { %v40_v3 = vshrl.u32 %v39_v0, 7  ;;  %s81_s4 = sshll.u32 %s170_s1, 4  ;;  %s82_s4 = int_to_ptr.vmem [resolvable:$true] %s81_s4 }
  0x28   :  { %v59_v4 = vunpack.c.0.s8 %v58_v2  ;;  %s139_s5 = scalar_lea.vmem %s82_s4, 128  ;;  %p144_p3 = scmp.lt.s32.totalorder %s82_s4, %s82_s4 }
  0x29   :  { %v41_v5 = vsub.s32 0, %v40_v3  ;;  %v45_v6 = vsub.s32 1, %v40_v3  ;;  %v49_v7 = vsub.s32 2, %v40_v3  ;;  %v53_v8 = vsub.s32 3, %v40_v3  ;;  %p140_p2 = scmp.ne.s32.totalorder %s82_s4, %s139_s5  ;;  %p145_p4 = scmp.lt.s32.totalorder %s139_s5, %s139_s5 }
  0x2a   :  { %v62_v10 = vsub.s32 %v59_v4, %v40_v3 }
  0x2b   :  { %v42_v11 = vrot.slane %v37_v9, %v41_v5  ;;  %v46_v12 = vrot.slane %v37_v9, %v45_v6  ;;  %v50_v13 = vrot.slane %v37_v9, %v49_v7  ;;  %v54_v14 = vrot.slane %v37_v9, %v53_v8  ;;  %p146_p5 = por %p145_p4, %p144_p3 }
  0x2d   :  { %v55_v15 = vcombine.low %v42_v11, %v46_v12  ;;  %v56_v16 = vcombine.low %v50_v13, %v54_v14  ;;  %p147_p6 = pnand %p146_p5, %p140_p2 }
  0x2f   :  { %v63_v17 = vrot.slane %v55_v15, %v62_v10  ;;  %v70_v18 = vrot.slane %v56_v16, %v62_v10 }
  0x31   :  { %v71_v20 = vcombine.low %v63_v17, %v70_v18 }
  0x33   :  { %v73_v21 = vadd.f32 %v71_v20, %v36_v19 }
  0x35   :  { %74 = vst [vmem:[#allocation7] sm:$0xff] %v73_v21 }
  0x36   :  { %150 = shalt.err (!%p147_p6)
}
  0x37   :  { %s151_s8 = scalar_lea.hbm %s224_s2, 128 }
  0x38   :  { %p152_p7 = scmp.ne.s32.totalorder %s224_s2, %s151_s8  ;;  %p155_p8 = scmp.lt.u32.totalorder %s151_s8, %s224_s2 }
  0x3a   :  { %p157_p9 = pnand %p155_p8, %p152_p7 }
  0x3c   :  { %160 = shalt.err (!%p157_p9)
}
  0x3d   :  { %84 = dma.vmem_to_hbm [thread:$0]  %s82_s4, 128, %s224_s2, [#allocation4]  }
  0x3e   :  { %165 = dma.done.wait [#allocation4], 128  }
  0x3f   :  { %166 = vsyncadd [#allocation4], 4294967168 }
  0x40   :  { %88 = vsyncpa [#allocation3], 1 }
  0x41   :  { %89 = vsyncpa [#allocation6], 1 }
  0x42   :  { %90 = vsyncpa [#allocation4], 1 }

</bundles_post_ra>
